<compile_context>
chip_gen: v7x
topology: tpu7x:2x2x1
jax: 0.10.0
libtpu: 0.0.40
codegen_flags: <defaults>
</compile_context>

<pallas_src>
import math
from functools import lru_cache, partial

import jax
import jax.numpy as jnp
from jax.experimental import pallas as pl
from jax.experimental.pallas import tpu as pltpu

BN_EPS = 1e-5
TM_MAX = 1024          # rows of the im2col matrix per block
TN_MAX = 1024          # output channels per block
TK_MAX = 1024          # reduction (KH*KW*Cin) per block
RESIDENT_K_MAX = 8192  # weight-resident (full-K) mode only for moderate K
_MB = 1 << 20


def _round_up(x, m):
    return -(-x // m) * m


@lru_cache(maxsize=1)
def _device_kind():
    try:
        return jax.devices()[0].device_kind.lower()
    except Exception:
        return ""


def _is_v5():
    return "v5" in _device_kind()


def _tile_budget_bytes():
    # v7x: 64 MiB physical VMEM per TensorCore -> tighter tile budget.
    return 20 * _MB if "v7" in _device_kind() else 48 * _MB


def _vmem_cap_bytes():
    return 48 * _MB if "v7" in _device_kind() else 100 * _MB


# ----------------------------------------------------------------------------
# Pallas GEMM kernel: (pre-BN+ReLU) -> matmul -> +bias (+add) (+ReLU)
# ----------------------------------------------------------------------------
def _mm_kernel(*refs, relu, has_pre, has_add):
    x_ref, w_ref, b_ref = refs[0], refs[1], refs[2]
    pos = 3
    if has_pre:
        s_ref, pb_ref = refs[pos], refs[pos + 1]
        pos += 2
    if has_add:
        add_ref = refs[pos]
        pos += 1
    o_ref, acc_ref = refs[pos], refs[pos + 1]

    k = pl.program_id(2)

    @pl.when(k == 0)
    def _():
        acc_ref[...] = jnp.zeros_like(acc_ref)

    xv = x_ref[...]
    if has_pre:
        # pre-activation BatchNorm + ReLU, rides in VPU slots under the MXU.
        # scale/bias dtype (bf16 on v6e/v7x, f32 on v5e) is picked by the wrapper.
        xv = jnp.maximum(xv * s_ref[...] + pb_ref[...], 0.0)
        xv = xv.astype(w_ref.dtype)
    acc_ref[...] += jnp.dot(xv, w_ref[...], preferred_element_type=jnp.float32)

    @pl.when(k == pl.num_programs(2) - 1)
    def _():
        r = acc_ref[...] + b_ref[...]
        if has_add:
            r = r + add_ref[...].astype(jnp.float32)
        if relu:
            r = jnp.maximum(r, 0.0)
        o_ref[...] = r.astype(o_ref.dtype)


# ----------------------------------------------------------------------------
# Tile selection under a per-generation VMEM budget
# ----------------------------------------------------------------------------
def _footprint(tm, tk, tn, has_pre, has_add, out_bytes):
    """Approximate VMEM bytes of the pipelined GEMM (incl. double buffers)."""
    f = 2 * tm * tk * 2            # x  (bf16, double-buffered)
    f += 2 * tk * tn * 2           # w  (bf16, double-buffered)
    f += 2 * tm * tn * out_bytes   # out (double-buffered)
    f += tm * tn * 4               # f32 accumulator scratch
    f += 2 * tn * 4                # bias
    if has_pre:
        f += 4 * tk * 4            # pre scale/bias rows
    if has_add:
        f += 2 * tm * tn * 2       # residual (bf16, double-buffered)
    return f


def _pick_tk(kp, cap):
    """Largest multiple-of-128 tile <= cap that minimises padded K."""
    best_pad, best_tk = None, 128
    for tk in range(128, min(cap, kp) + 1, 128):
        padded = _round_up(kp, tk)
        if best_pad is None or padded < best_pad or \
                (padded == best_pad and tk > best_tk):
            best_pad, best_tk = padded, tk
    return best_tk


def _select_tiles(m, k, n, has_pre, has_add, out_bytes):
    """Pick (tm, tk, tn, weight_resident) under the generation's VMEM budget."""
    budget = _tile_budget_bytes()
    mr = _round_up(max(m, 1), 16)
    kp = _round_up(k, 128)
    np_ = _round_up(n, 128)

    # 1) weight-resident: full (K, N) weight as one block -> constant block
    #    index, DMA'd once, reused for every M tile (no weight re-streaming;
    #    single N tile so the pre-BN prologue runs once per x tile).
    if kp <= RESIDENT_K_MAX:
        tm0 = min(TM_MAX, mr)
        tm = tm0
        while tm >= 16 and _footprint(tm, kp, np_, has_pre, has_add, out_bytes) > budget:
            tm //= 2
        if tm >= 16 and (tm == tm0 or tm >= 256) and \
                _footprint(tm, kp, np_, has_pre, has_add, out_bytes) <= budget:
            return tm, kp, np_, True

    # 2) streaming mode with big, balanced tiles.
    tm = min(TM_MAX, mr)
    tn = min(TN_MAX, np_)
    tk = _pick_tk(kp, TK_MAX)
    while _footprint(tm, tk, tn, has_pre, has_add, out_bytes) > budget:
        if tn > 256:
            tn //= 2
        elif tm > 256:
            tm //= 2
        elif tk > 256:
            tk = _pick_tk(kp, tk // 2)
        elif tn > 128:
            tn //= 2
        elif tm > 16:
            tm //= 2
        else:
            break
    return tm, tk, tn, False


def matmul_bias_act(x, w, b, relu=False, pre=None, add=None,
                    out_dtype=jnp.bfloat16):
    """(M,K)@(K,N) + b with optional fused pre-BN+ReLU / residual add / ReLU."""
    M, K = x.shape
    K2, N = w.shape
    assert K == K2
    has_pre = pre is not None
    has_add = add is not None
    out_bytes = jnp.dtype(out_dtype).itemsize

    tm, tk, tn, _resident = _select_tiles(M, K, N, has_pre, has_add, out_bytes)
    Kp = _round_up(K, tk)
    Np = _round_up(N, tn)
    # Pad M only for tiny problems; large ragged M uses cdiv edge blocks so we
    # never copy the big im2col matrix just to pad rows.
    if M % tm == 0:
        Mp = M
    elif M <= 4 * tm:
        Mp = _round_up(M, tm)
    else:
        Mp = M

    xp = x.astype(jnp.bfloat16)
    if Mp > M or Kp > K:
        xp = jnp.pad(xp, ((0, max(Mp - M, 0)), (0, Kp - K)))
    wp = w.astype(jnp.bfloat16)
    if Kp > K or Np > N:
        wp = jnp.pad(wp, ((0, Kp - K), (0, Np - N)))
    bp = b.astype(jnp.float32)
    if Np > N:
        bp = jnp.pad(bp, ((0, Np - N),))
    bp = bp.reshape(1, Np)

    in_specs = [
        pl.BlockSpec((tm, tk), lambda i, j, k: (i, k)),
        pl.BlockSpec((tk, tn), lambda i, j, k: (k, j)),
        pl.BlockSpec((1, tn), lambda i, j, k: (0, j)),
    ]
    args = [xp, wp, bp]

    if has_pre:
        s, pb = pre
        pdt = jnp.float32 if _is_v5() else jnp.bfloat16   # bf16 VPU on v6e/v7x
        sp = s.astype(pdt)
        pbp = pb.astype(pdt)
        if Kp > K:
            sp = jnp.pad(sp, ((0, Kp - K),))
            pbp = jnp.pad(pbp, ((0, Kp - K),))
        sp = sp.reshape(1, Kp)
        pbp = pbp.reshape(1, Kp)
        in_specs += [pl.BlockSpec((1, tk), lambda i, j, k: (0, k)),
                     pl.BlockSpec((1, tk), lambda i, j, k: (0, k))]
        args += [sp, pbp]

    if has_add:
        ap = add.astype(jnp.bfloat16)
        if Mp > M or Np > N:
            ap = jnp.pad(ap, ((0, max(Mp - M, 0)), (0, Np - N)))
        in_specs += [pl.BlockSpec((tm, tn), lambda i, j, k: (i, j))]
        args += [ap]

    footprint = _footprint(tm, tk, tn, has_pre, has_add, out_bytes)
    vmem_limit = int(min(_vmem_cap_bytes(), max(32 * _MB, footprint + 24 * _MB)))

    out = pl.pallas_call(
        partial(_mm_kernel, relu=relu, has_pre=has_pre, has_add=has_add),
        out_shape=jax.ShapeDtypeStruct((Mp, Np), out_dtype),
        grid_spec=pltpu.PrefetchScalarGridSpec(
            num_scalar_prefetch=0,
            grid=(pl.cdiv(Mp, tm), Np // tn, Kp // tk),
            in_specs=in_specs,
            out_specs=pl.BlockSpec((tm, tn), lambda i, j, k: (i, j)),
            scratch_shapes=[pltpu.VMEM((tm, tn), jnp.float32)],
        ),
        compiler_params=pltpu.CompilerParams(
            dimension_semantics=("parallel", "parallel", "arbitrary"),
            vmem_limit_bytes=vmem_limit),
    )(*args)
    if Mp > M or Np > N:
        out = out[:M, :N]
    return out


# ----------------------------------------------------------------------------
# Conv / BN / pool / upsample helpers (im2col & data movement are JAX glue)
# ----------------------------------------------------------------------------
def conv2d(x, w, bias=None, stride=1, dilation=1, padding=0, relu=False,
           pre=None, add=None, out_dtype=jnp.bfloat16):
    """conv as im2col + Pallas GEMM.  `pre=(scale,bias)` fuses a preceding
    BatchNorm+ReLU; `add` fuses a residual shortcut into the epilogue."""
    N, H, W, Cin = x.shape
    KH, KW, Cin2, Cout = w.shape
    assert Cin == Cin2

    kernel_pre = None
    if pre is not None:
        if KH == 1 and KW == 1:
            kernel_pre = pre          # exact: 1x1 conv has no spatial padding
        else:
            s, b0 = pre               # apply before zero-padding (exact); XLA
            x = jnp.maximum(x * s + b0, 0.0)   # fuses this into im2col producer
    x = x.astype(jnp.bfloat16)

    if padding:
        x = jnp.pad(x, ((0, 0), (padding, padding), (padding, padding), (0, 0)))
    Hp, Wp = H + 2 * padding, W + 2 * padding
    Ho = (Hp - dilation * (KH - 1) - 1) // stride + 1
    Wo = (Wp - dilation * (KW - 1) - 1) // stride + 1

    if KH == 1 and KW == 1:
        cols = x[:, ::stride, ::stride, :][:, :Ho, :Wo, :]
    else:
        # TODO(synk): im2col still materializes KH*KW shifted copies in HBM; a
        # direct-conv kernel (taps as a K-grid axis, shifted windows DMA'd
        # straight from the padded activation) would remove that traffic.
        patches = []
        for kh in range(KH):
            for kw in range(KW):
                h0, w0 = kh * dilation, kw * dilation
                patches.append(
                    x[:, h0:h0 + stride * (Ho - 1) + 1:stride,
                      w0:w0 + stride * (Wo - 1) + 1:stride, :])
        cols = jnp.concatenate(patches, axis=-1)
    cols = cols.reshape(N * Ho * Wo, KH * KW * Cin)
    wmat = w.reshape(KH * KW * Cin, Cout)
    if bias is None:
        bias = jnp.zeros((Cout,), jnp.float32)
    add2 = None if add is None else add.reshape(N * Ho * Wo, Cout)
    out = matmul_bias_act(cols, wmat, bias, relu=relu, pre=kernel_pre,
                          add=add2, out_dtype=out_dtype)
    return out.reshape(N, Ho, Wo, Cout)


def bn_fold(w, bn):
    """Fold eval-mode BatchNorm that FOLLOWS a conv into (weight, bias)."""
    s = bn['gamma'] / jnp.sqrt(bn['var'] + BN_EPS)
    return w * s, bn['beta'] - bn['mean'] * s


def bn_sb(bn):
    """Eval-mode BatchNorm as per-channel (scale, bias) for pre-act fusion."""
    s = bn['gamma'] / jnp.sqrt(bn['var'] + BN_EPS)
    return s, bn['beta'] - bn['mean'] * s


def maxpool_3x3_s2(x):
    """nn.MaxPool2d(3, stride=2, padding=1) on NHWC."""
    N, H, W, C = x.shape
    xp = jnp.pad(x, ((0, 0), (1, 1), (1, 1), (0, 0)),
                 constant_values=-jnp.inf)
    Ho = (H + 2 - 3) // 2 + 1
    Wo = (W + 2 - 3) // 2 + 1
    out = None
    for kh in range(3):
        for kw in range(3):
            sl = xp[:, kh:kh + 2 * (Ho - 1) + 1:2,
                    kw:kw + 2 * (Wo - 1) + 1:2, :]
            out = sl if out is None else jnp.maximum(out, sl)
    return out


def _interp_matrix(in_size, out_size):
    """align_corners=True bilinear interpolation matrix (out_size, in_size)."""
    if in_size == out_size:
        return jnp.eye(in_size, dtype=jnp.float32)
    if in_size == 1 or out_size == 1:
        src = jnp.zeros((out_size,), jnp.float32)
    else:
        src = jnp.arange(out_size, dtype=jnp.float32) * (
            (in_size - 1) / (out_size - 1))
    i0 = jnp.floor(src).astype(jnp.int32)
    i1 = jnp.minimum(i0 + 1, in_size - 1)
    t = src - i0.astype(jnp.float32)
    m0 = jax.nn.one_hot(i0, in_size, dtype=jnp.float32) * (1.0 - t)[:, None]
    m1 = jax.nn.one_hot(i1, in_size, dtype=jnp.float32) * t[:, None]
    return m0 + m1


def upsample_bilinear(x, out_h, out_w):
    """F.interpolate(mode='bilinear', align_corners=True) on NHWC, expressed
    as two interpolation matmuls (MXU-friendly, no XLA gathers).  Returns f32."""
    N, H, W, C = x.shape
    if H == out_h and W == out_w:
        return x
    hm = _interp_matrix(H, out_h)
    wm = _interp_matrix(W, out_w)
    y = jnp.einsum('oh,nhwc->nowc', hm, x.astype(jnp.float32))
    y = jnp.einsum('pw,nowc->nopc', wm, y)
    return y


# ----------------------------------------------------------------------------
# Parameter initialization (deterministic, synthetic — no checkpoint)
# ----------------------------------------------------------------------------
class KeyGen:
    def __init__(self, seed):
        self._key = jax.random.PRNGKey(seed)

    def __call__(self):
        self._key, sub = jax.random.split(self._key)
        return sub


def conv_w(kg, kh, kw, cin, cout):
    std = 1.0 / math.sqrt(kh * kw * cin)
    return jax.random.normal(kg(), (kh, kw, cin, cout), jnp.float32) * std


def bn_params(kg, c):
    return dict(
        gamma=1.0 + 0.1 * jax.random.normal(kg(), (c,), jnp.float32),
        beta=0.05 * jax.random.normal(kg(), (c,), jnp.float32),
        mean=0.05 * jax.random.normal(kg(), (c,), jnp.float32),
        var=0.9 + 0.2 * jax.random.uniform(kg(), (c,), jnp.float32),
    )


# wider_resnet38_a2(dilation=True) topology.
# TODO(synk): backbone blocks follow the standard wider_resnet38_a2
# IdentityResidualBlock definition (pre-act BN+ReLU); its source was not
# included in the prompt.
STRUCTURE = [3, 3, 6, 3, 1, 1]
CHANNELS = [(128, 128), (256, 256), (512, 512), (512, 1024),
            (512, 1024, 2048), (1024, 2048, 4096)]


def init_block(kg, in_ch, chans, stride, dilation):
    p = dict(channels=chans, stride=stride, dilation=dilation)
    p['bn1'] = bn_params(kg, in_ch)
    need_proj = (stride != 1) or (in_ch != chans[-1])
    p['proj_w'] = conv_w(kg, 1, 1, in_ch, chans[-1]) if need_proj else None
    if len(chans) == 2:
        p['conv1_w'] = conv_w(kg, 3, 3, in_ch, chans[0])
        p['bn2'] = bn_params(kg, chans[0])
        p['conv2_w'] = conv_w(kg, 3, 3, chans[0], chans[1])
    else:
        p['conv1_w'] = conv_w(kg, 1, 1, in_ch, chans[0])
        p['bn2'] = bn_params(kg, chans[0])
        p['conv2_w'] = conv_w(kg, 3, 3, chans[0], chans[1])
        p['bn3'] = bn_params(kg, chans[1])
        p['conv3_w'] = conv_w(kg, 1, 1, chans[1], chans[2])
    return p


def init_backbone(kg):
    params = {'mod1_w': conv_w(kg, 3, 3, 3, 64)}     # mod1: 3x3 conv 3->64
    in_ch = 64
    for mod_id, num in enumerate(STRUCTURE):
        blocks = []
        for block_id in range(num):
            dil = 2 if mod_id == 3 else (4 if mod_id > 3 else 1)
            stride = 2 if (block_id == 0 and mod_id == 2) else 1
            blocks.append(init_block(kg, in_ch, CHANNELS[mod_id], stride, dil))
            in_ch = CHANNELS[mod_id][-1]
        params['mod%d' % (mod_id + 2)] = blocks
    return params


def init_aspp(kg, in_dim=4096, red=256, rates=(12, 24, 36)):
    # output_stride=8 => rates (6,12,18) doubled to (12,24,36)
    p = {'rates': rates}
    p['b0_w'], p['b0_bn'] = conv_w(kg, 1, 1, in_dim, red), bn_params(kg, red)
    for i, _ in enumerate(rates):
        p['b%d_w' % (i + 1)] = conv_w(kg, 3, 3, in_dim, red)
        p['b%d_bn' % (i + 1)] = bn_params(kg, red)
    p['img_w'], p['img_bn'] = conv_w(kg, 1, 1, in_dim, red), bn_params(kg, red)
    return p


def init_model(kg, num_classes):
    p = init_backbone(kg)
    p['aspp'] = init_aspp(kg)
    p['bot_fine_w'] = conv_w(kg, 1, 1, 128, 48)
    p['bot_aspp_w'] = conv_w(kg, 1, 1, 1280, 256)
    p['final'] = dict(
        conv1_w=conv_w(kg, 3, 3, 256 + 48, 256), bn1=bn_params(kg, 256),
        conv2_w=conv_w(kg, 3, 3, 256, 256),      bn2=bn_params(kg, 256),
        conv3_w=conv_w(kg, 1, 1, 256, num_classes),
    )
    return p


# ----------------------------------------------------------------------------
# Forward pass
# ----------------------------------------------------------------------------
def identity_residual_block(x, p):
    stride, dil = p['stride'], p['dilation']
    pre1 = bn_sb(p['bn1'])
    # shortcut: identity of the raw input, or proj(bn1(x)) fused into the GEMM
    shortcut = x if p['proj_w'] is None else conv2d(x, p['proj_w'],
                                                    stride=stride, pre=pre1)
    if len(p['channels']) == 2:
        out = conv2d(x, p['conv1_w'], stride=stride, dilation=dil,
                     padding=dil, pre=pre1)
        out = conv2d(out, p['conv2_w'], dilation=dil, padding=dil,
                     pre=bn_sb(p['bn2']), add=shortcut)
    else:
        out = conv2d(x, p['conv1_w'], stride=stride, pre=pre1)          # 1x1
        out = conv2d(out, p['conv2_w'], dilation=dil, padding=dil,
                     pre=bn_sb(p['bn2']))                               # 3x3
        # TODO(synk): nn.Dropout2d (p=0.3 in mod6, p=0.5 in mod7) — identity
        # in eval mode; training-mode stochastic dropout not implemented.
        out = conv2d(out, p['conv3_w'], pre=bn_sb(p['bn3']),
                     add=shortcut)                                      # 1x1
    return out


def run_blocks(x, blocks):
    for bp in blocks:
        x = identity_residual_block(x, bp)
    return x


def aspp_forward(x, p):
    N, H, W, C = x.shape
    # image pooling (AdaptiveAvgPool2d(1)) — tiny reduction, plain JAX glue
    img = jnp.mean(x.astype(jnp.float32), axis=(1, 2), keepdims=True)
    wf, bf_ = bn_fold(p['img_w'], p['img_bn'])
    img = conv2d(img, wf, bf_, relu=True)
    branches = [upsample_bilinear(img, H, W).astype(jnp.bfloat16)]
    wf, bf_ = bn_fold(p['b0_w'], p['b0_bn'])
    branches.append(conv2d(x, wf, bf_, relu=True))
    for i, r in enumerate(p['rates']):
        wf, bf_ = bn_fold(p['b%d_w' % (i + 1)], p['b%d_bn' % (i + 1)])
        branches.append(conv2d(x, wf, bf_, dilation=r, padding=r, relu=True))
    return jnp.concatenate(branches, axis=-1)


def deepwv3plus_forward(params, inp_nchw):
    N, _, H, W = inp_nchw.shape
    x = jnp.transpose(inp_nchw, (0, 2, 3, 1)).astype(jnp.float32)  # -> NHWC
    x = conv2d(x, params['mod1_w'], padding=1)                     # mod1
    m2 = run_blocks(maxpool_3x3_s2(x), params['mod2'])             # pool2,mod2
    x = run_blocks(maxpool_3x3_s2(m2), params['mod3'])             # pool3,mod3
    x = run_blocks(x, params['mod4'])                              # mod4 (s2)
    x_tmp = run_blocks(x, params['mod5'])                          # mod5
    x = run_blocks(x_tmp, params['mod6'])                          # mod6
    x = run_blocks(x, params['mod7'])                              # mod7
    x = aspp_forward(x, params['aspp'])                            # ASPP (1280)
    dec0_up = conv2d(x, params['bot_aspp_w'])                      # 1280->256
    dec0_fine = conv2d(m2, params['bot_fine_w'])                   # 128->48
    dec0_up = upsample_bilinear(dec0_up, m2.shape[1], m2.shape[2])
    dec0 = jnp.concatenate(
        [dec0_fine, dec0_up.astype(dec0_fine.dtype)], axis=-1)     # 304 ch
    f = params['final']
    w1, b1 = bn_fold(f['conv1_w'], f['bn1'])
    d = conv2d(dec0, w1, b1, padding=1, relu=True)
    # TODO(synk): nn.Dropout(p=0.5) — identity in eval mode.
    w2, b2 = bn_fold(f['conv2_w'], f['bn2'])
    d = conv2d(d, w2, b2, padding=1, relu=True)
    d = conv2d(d, f['conv3_w'], out_dtype=jnp.float32)             # 256->classes
    out = upsample_bilinear(d, H, W)
    return jnp.transpose(out, (0, 3, 1, 2))                        # -> NCHW


# ----------------------------------------------------------------------------
if __name__ == "__main__":
    num_classes = 19
    params = init_model(KeyGen(1234), num_classes)
    inp = jax.random.normal(jax.random.PRNGKey(0), (2, 3, 32, 32), jnp.float32)
    out = deepwv3plus_forward(params, inp)
    out = jax.block_until_ready(out)
    assert out.shape == (2, num_classes, 32, 32), out.shape
    assert bool(jnp.isfinite(out).all())
    print("KERNEL_OK")
</pallas_src>

<mosaic_0001>
module attributes {stable_mosaic.version = 11 : i64} {
  func.func @_mm_kernel(%arg0: i32, %arg1: i32, %arg2: i32, %arg3: memref<1024x128xbf16, #tpu.memory_space<vmem>>, %arg4: memref<128x128xbf16, #tpu.memory_space<vmem>>, %arg5: memref<1x128xf32, #tpu.memory_space<vmem>>, %arg6: memref<1024x128xbf16, #tpu.memory_space<vmem>>, %arg7: memref<1024x128xf32, #tpu.memory_space<vmem>>) attributes {dimension_semantics = [#tpu.dimension_semantics<parallel>, #tpu.dimension_semantics<parallel>, #tpu.dimension_semantics<arbitrary>], iteration_bounds = array<i64: 2, 1, 1>, scalar_prefetch = 0 : i64, scratch_operands = 1 : i64, tpu.core_type = #tpu.core_type<tc>, window_params = [{transform_indices = @transform_0, window_bounds = array<i64: 1024, 128>}, {transform_indices = @transform_1, window_bounds = array<i64: 128, 128>}, {transform_indices = @transform_2, window_bounds = array<i64: 1, 128>}, {transform_indices = @transform_3, window_bounds = array<i64: 1024, 128>}]} {
    %c0_i32 = arith.constant 0 : i32
    %0 = arith.cmpi eq, %arg2, %c0_i32 : i32
    %1 = arith.extui %0 : i1 to i32
    %c0_i32_0 = arith.constant 0 : i32
    %2 = arith.cmpi ne, %1, %c0_i32_0 : i32
    scf.if %2 {
      %cst_10 = arith.constant 0.000000e+00 : f32
      %12 = vector.broadcast %cst_10 : f32 to vector<1024x128xf32>
      %c0_11 = arith.constant 0 : index
      %c0_12 = arith.constant 0 : index
      %13 = vector.load %arg7[%c0_11, %c0_12] : memref<1024x128xf32, #tpu.memory_space<vmem>>, vector<1024x128xf32>
      tpu.vector_store %arg7[%c0_11, %c0_12], %12 {strides = array<i32>} : memref<1024x128xf32, #tpu.memory_space<vmem>>, vector<1024x128xf32>,
    } else {
    }
    %c0 = arith.constant 0 : index
    %c0_1 = arith.constant 0 : index
    %3 = vector.load %arg3[%c0, %c0_1] : memref<1024x128xbf16, #tpu.memory_space<vmem>>, vector<1024x128xbf16>
    %c0_2 = arith.constant 0 : index
    %c0_3 = arith.constant 0 : index
    %4 = vector.load %arg7[%c0_2, %c0_3] : memref<1024x128xf32, #tpu.memory_space<vmem>>, vector<1024x128xf32>
    %c0_4 = arith.constant 0 : index
    %c0_5 = arith.constant 0 : index
    %5 = vector.load %arg4[%c0_4, %c0_5] : memref<128x128xbf16, #tpu.memory_space<vmem>>, vector<128x128xbf16>
    %cst = arith.constant dense<0.000000e+00> : vector<1024x128xf32>
    %6 = tpu.matmul %3, %5, %cst {dimension_numbers = #tpu.dot_dimension_numbers<[1], [0], [0], [1], [0, 0, 1, 1], [], []>} : vector<1024x128xbf16>, vector<128x128xbf16>, vector<1024x128xf32> -> vector<1024x128xf32>
    %7 = arith.addf %4, %6 : vector<1024x128xf32>
    %c0_6 = arith.constant 0 : index
    %c0_7 = arith.constant 0 : index
    %8 = vector.load %arg7[%c0_6, %c0_7] : memref<1024x128xf32, #tpu.memory_space<vmem>>, vector<1024x128xf32>
    tpu.vector_store %arg7[%c0_6, %c0_7], %7 {strides = array<i32>} : memref<1024x128xf32, #tpu.memory_space<vmem>>, vector<1024x128xf32>,
    %c0_i32_8 = arith.constant 0 : i32
    %9 = arith.cmpi eq, %arg2, %c0_i32_8 : i32
    %10 = arith.extui %9 : i1 to i32
    %c0_i32_9 = arith.constant 0 : i32
    %11 = arith.cmpi ne, %10, %c0_i32_9 : i32
    scf.if %11 {
      %c0_10 = arith.constant 0 : index
      %c0_11 = arith.constant 0 : index
      %12 = vector.load %arg7[%c0_10, %c0_11] : memref<1024x128xf32, #tpu.memory_space<vmem>>, vector<1024x128xf32>
      %c0_12 = arith.constant 0 : index
      %c0_13 = arith.constant 0 : index
      %13 = vector.load %arg5[%c0_12, %c0_13] : memref<1x128xf32, #tpu.memory_space<vmem>>, vector<1x128xf32>
      %14 = vector.broadcast %13 : vector<1x128xf32> to vector<1024x128xf32>
      %15 = arith.addf %12, %14 : vector<1024x128xf32>
      %16 = arith.truncf %15 : vector<1024x128xf32> to vector<1024x128xbf16>
      %c0_14 = arith.constant 0 : index
      %c0_15 = arith.constant 0 : index
      %17 = vector.load %arg6[%c0_14, %c0_15] : memref<1024x128xbf16, #tpu.memory_space<vmem>>, vector<1024x128xbf16>
      tpu.vector_store %arg6[%c0_14, %c0_15], %16 {strides = array<i32>} : memref<1024x128xbf16, #tpu.memory_space<vmem>>, vector<1024x128xbf16>,
    } else {
    }
    return
  }
  func.func @transform_0(%arg0: i32, %arg1: i32, %arg2: i32) -> (i32, i32) {
    %c0_i32 = arith.constant 0 : i32
    return %arg0, %arg2 : i32, i32
  }
  func.func @transform_1(%arg0: i32, %arg1: i32, %arg2: i32) -> (i32, i32) {
    %c0_i32 = arith.constant 0 : i32
    return %arg2, %arg1 : i32, i32
  }
  func.func @transform_2(%arg0: i32, %arg1: i32, %arg2: i32) -> (i32, i32) {
    %c0_i32 = arith.constant 0 : i32
    %c0_i32_0 = arith.constant 0 : i32
    return %c0_i32, %arg1 : i32, i32
  }
  func.func @transform_3(%arg0: i32, %arg1: i32, %arg2: i32) -> (i32, i32) {
    %c0_i32 = arith.constant 0 : i32
    return %arg0, %arg1 : i32, i32
  }
}

</mosaic_0001>

<bundles_post_ra>
// kernel: tpu_custom_call.1
= control target key start
LH: loop header
LB: loop body
LE: loop exit
PB: predicated region body
PF: predicated region fallthrough
CT: control target
= control target key end

     0   :  { %8 = vsyncpa [#allocation4], 0  ;;  %s4710_s0 = inlined_call_operand.hbm [shape: bf16[2048,128], index: 0, kind: input, shape index: {}]   ;;  %s4711_s1 = inlined_call_operand.hbm [shape: bf16[128,128], index: 1, kind: input, shape index: {}]   ;;  %s4712_s2 = inlined_call_operand.vmem [shape: f32[1,128], index: 2, kind: input, shape index: {}]   ;;  %s4713_s3 = inlined_call_operand.hbm [shape: bf16[2048,128], index: 3, kind: output, shape index: {}]  }
   0x1   :  { %10 = vsyncpa [#allocation4 + $0x1], 0 }
   0x2   :  { %11 = vsyncpa [#allocation7], 0 }
   0x3   :  { %12 = vsyncpa [#allocation5], 0 }
   0x4   :  { %14 = vsyncpa [#allocation5 + $0x1], 0  ;;  %s4215_s12 = smov 0   ;;  %s4217_s13 = smov 0  }
   0x5   :  { %s4219_s14 = smov 0   ;;  %s4221_s15 = smov 0  }
   0x6   :  { %s4223_s16 = smov 0   ;;  %s4225_s17 = smov 0  }
   0x7 LB: > { %s2929_s18 = sadd.s32 4294967295, %s4186_s17   ;;  %s2930_s19 = sadd.s32 4294967294, %s4186_s17   ;;  %s4186_s17 = sphi %s4225_s17, %s20_s17   ;;  %s4182_s16 = sphi %s4223_s16, %s4737_s16   ;;  %s4178_s15 = sphi %s4221_s15, %s4736_s15   ;;  %s4174_s14 = sphi %s4219_s14, %s4735_s14   ;;  %s4170_s13 = sphi %s4217_s13, %s4734_s13   ;;  %s4166_s12 = sphi %s4215_s12, %s4733_s12  }
   0x8   : > { %p61_p0 = scmp.ne.s32.totalorder %s4170_s13, %s4166_s12  ;;  %p4249_p1 = scmp.eq.s32.totalorder %s2929_s18, 0 }
   0x9   : > { %p4253_p2 = scmp.eq.s32.totalorder %s2929_s18, 1  ;;  %p147_p3 = scmp.eq.s32.totalorder %s2930_s19, 1 }
   0xa   : > { %s4718_s20 = scalar_select %p4249_p1, 1, 0 }
   0xb   : > { %s4719_s21 = scalar_select %p4253_p2, 1, 0 }
   0xc   : > { %p4259_p4 = por %p4249_p1, %p61_p0  ;;  %p2931_p5 = scmp.ge.s32.totalorder %s4186_s17, 1 }
   0xd   : > { %p4264_p6 = por %p147_p3, %p61_p0  ;;  %p154_p7 = scmp.lt.s32.totalorder %s4186_s17, 3 }
   0xe   : > { %s4720_s22 = scalar_select %p4259_p4, 1, 0 }
   0xf   : > { %s4721_s23 = scalar_select %p4264_p6, 1, 0 }
  0x10   : > { %p4269_p8 = pnand %p2931_p5, %p154_p7  ;;  %s4188_s25 = smov [#allocation6]  }
  0x11   : > { %s170_s26 = sshll.u32 %s4188_s25, 4  ;;  %s39_s28 = sadd.s32 1, %s4182_s16  ;;  %s171_s26 = int_to_ptr.vmem [resolvable:$true] %s170_s26 }
  0x12   : > { %s4722_s24 = scalar_select %p4269_p8, 1, 0 }
  0x13   : > { %p3901_p9 = pneg %p4269_p8  ;;  %s4042_s4 = scalar_lea.hbm %s4711_s1, 1024 }
  0x14   : > { %p4043_p12 = scmp.ne.s32.totalorder %s4711_s1, %s4042_s4  ;;  %p4049_p5 = scmp.lt.u32.totalorder %s4042_s4, %s4711_s1 }
  0x15   : > { %p4278_p11 = pnand %p3901_p9, %p4249_p1 }
  0x17   : > { %p4044_p13 = pneg %p4278_p11 }
  0x19   : > { %p4045_p0 = pnand %p4044_p13, %p4043_p12 }
  0x1b   : > { %p4046_p3 = pneg %p4045_p0 }
  0x1d   : > { %p4051_p7 = pnand %p4049_p5, %p4046_p3 }
  0x1f   : > { %4054 = shalt.err (!%p4051_p7)
}
  0x20   : > { %s4055_s9 = scalar_lea.vmem %s171_s26, 1024  ;;  %p4063_p1 = scmp.lt.s32.totalorder %s171_s26, %s171_s26 }
  0x21   : > { %p4056_p9 = scmp.ne.s32.totalorder %s171_s26, %s4055_s9  ;;  %p4064_p4 = scmp.lt.s32.totalorder %s4055_s9, %s4055_s9 }
  0x23   : > { %p4058_p10 = pnand %p4056_p9, %p4044_p13  ;;  %p4065_p8 = por %p4064_p4, %p4063_p1 }
  0x25   : > { %p4059_p6 = pneg %p4058_p10 }
  0x27   : > { %p4066_p2 = pnand %p4065_p8, %p4059_p6 }
  0x29   : > { %4069 = shalt.err (!%p4066_p2)
}
  0x2a   : > { %s4189_s10 = smov 64   ;;  %s4190_s11 = smov 4  }
  0x2b   : > { %3904 = dma.hbm_to_vmem [thread:$0]  (!%p4278_p11), %s4711_s1, 1024, %s171_s26, [#allocation7], %s4189_s10, %s4189_s10, %s4190_s11  }
  0x2c   : > { %p41_p1 = scmp.ge.s32.totalorder %s39_s28, 2  ;;  %s48_s25 = sadd.s32 1, %s4174_s14 }
  0x2d   : > { %p55_p2 = scmp.ne.s32.totalorder %s4174_s14, %s4170_s13  ;;  %p56_p4 = scmp.eq.s32.totalorder %s4186_s17, 0 }
  0x2e   : > { %s4739_s28 = smov (%p41_p1, %s39_s28), 0  ;;  %p4725_p8 = scmp.ne.s32.totalorder %s4719_s21, 0 }
  0x2f   : > { %p4308_p6 = por %p56_p4, %p55_p2  ;;  %s43_s30 = ssub.s32 %s4182_s16, %s4739_s28 }
  0x30   : > { %p4314_p10 = por %p4725_p8, %p55_p2  ;;  %p3914_p12 = scmp.lt.s32.totalorder %s4186_s17, 2 }
  0x31   : > { %p46_p11 = scmp.eq.s32.totalorder %s43_s30, 0  ;;  %s190_s26 = sand.u32 1, %s4174_s14  }
  0x32   : > { %s2935_s4 = sshll.u32 %s190_s26, 9  ;;  %s3148_s6 = sshll.u32 %s4182_s16, 13 }
  0x33   : > { %s4323_s5 = scalar_select %p46_p11, %s4174_s14, %s48_s25  }
  0x34   : > { %s4329_s9 = scalar_lea.hbm %s4710_s0, %s3148_s6  ;;  %s194_s21 = scalar_lea.vmem [#allocation3], %s2935_s4 }
  0x35   : > { %s202_s18 = sshll.u32 %s194_s21, 4  ;;  %p4335_p13 = pnand %p3914_p12, %p4308_p6  ;;  %s4331_s18 = int_to_ptr.vmem [resolvable:$true] %s202_s18 }
  0x36   : > { %s4339_s25 = scalar_lea.sflag [#allocation4], %s190_s26  ;;  %s4070_s30 = scalar_lea.hbm %s4329_s9, 8192 }
  0x37   : > { %p4071_p0 = scmp.ne.s32.totalorder %s4329_s9, %s4070_s30  ;;  %p4072_p3 = pneg %p4335_p13 }
  0x38   : > { %s4075_s29 = scalar_lea.hbm %s4710_s0, 16384  ;;  %p4076_p9 = scmp.lt.u32.totalorder %s4329_s9, %s4710_s0 }
  0x39   : > { %p4073_p5 = pnand %p4072_p3, %p4071_p0  ;;  %p4077_p1 = scmp.lt.u32.totalorder %s4075_s29, %s4070_s30 }
  0x3a   : > { %p4079_p4 = scmp.lt.u32.totalorder %s4070_s30, %s4329_s9 }
  0x3b   : > { %p4074_p7 = pneg %p4073_p5  ;;  %p4078_p2 = por %p4077_p1, %p4076_p9 }
  0x3d   : > { %p4080_p6 = por %p4079_p4, %p4078_p2 }
  0x3f   : > { %p4081_p8 = pnand %p4080_p6, %p4074_p7 }
  0x41   : > { %4084 = shalt.err (!%p4081_p8)
}
  0x42   : > { %s4085_s26 = scalar_lea.vmem %s4331_s18, 8192  ;;  %s4191_s21 = smov [#allocation3]  }
  0x43   : > { %p4086_p12 = scmp.ne.s32.totalorder %s4331_s18, %s4085_s26  ;;  %s4090_s4 = sshll.u32 %s4191_s21, 4  ;;  %s4091_s4 = int_to_ptr.vmem [resolvable:$false] %s4090_s4 }
  0x44   : > { %s4092_s6 = scalar_lea.vmem %s4091_s4, 16384  ;;  %p4093_p5 = scmp.lt.s32.totalorder %s4331_s18, %s4091_s4 }
  0x45   : > { %p4088_p11 = pnand %p4086_p12, %p4072_p3  ;;  %p4094_p9 = scmp.lt.s32.totalorder %s4092_s6, %s4085_s26 }
  0x47   : > { %p4089_p0 = pneg %p4088_p11  ;;  %p4095_p1 = por %p4094_p9, %p4093_p5 }
  0x49   : > { %p4096_p2 = pnand %p4095_p1, %p4089_p0 }
  0x4b   : > { %4099 = shalt.err (!%p4096_p2)
}
  0x4c   : > { %3908 = dma.hbm_to_vmem [thread:$0]  (!%p4335_p13), %s4329_s9, 8192, %s4331_s18, %s4339_s25, %s4189_s10, %s4189_s10, %s4190_s11  }
  0x4d   : > { %p4728_p3 = scmp.ne.s32.totalorder %s4722_s24, 0 }
  0x4e   : > { %s4373_s30 = sand.u32 (!%p4728_p3), 1, %s4170_s13   ;;  %p4729_p7 = scmp.ne.s32.totalorder (!%p4728_p3), %s4720_s22, 0 }
  0x4f   : > { %214 = sbr.rel (%p4728_p3) target bundleno = 477 (0x1dd), region = 32  ;;  %s2939_s29 = sshll.u32 (!%p4728_p3), %s4373_s30, 9 }
  0x50   : > { %s217_s7 = scalar_lea.sflag (!%p4728_p3), [#allocation4], %s4373_s30  ;;  %s4379_s19 = scalar_lea.vmem (!%p4728_p3), [#allocation3], %s2939_s29 }
  0x56   : > { %4153 = dma.done.wait (%p4729_p7), %s217_s7, 8192  }
  0x57   : > { %4155 = vsyncadd (%p4729_p7), %s217_s7, 4294959104  ;;  %p4730_p13 = scmp.ne.s32.totalorder %s4718_s20, 0 }
  0x59   : > { %4157 = dma.done.wait (%p4730_p13), [#allocation7], 1024  }
  0x5a   : > { %4159 = vsyncadd (%p4730_p13), [#allocation7], 4294966272  ;;  %v3970_v0 = vld [vmem:[#allocation6] sm:$0xff]   ;;  %v3971_v1 = vld [vmem:[#allocation6 + $0x8] sm:$0xff]   ;;  %s4468_s24 = scalar_lea.vmem [#allocation8], %s2939_s29  ;;  %s3277_s10 = sshll.u32 %s4178_s15, 13 }
  0x5b   : > { %3733 = vmatprep.subr.bf16.mxu0 %v3970_v0  ;;  %3877 = vmatprep.subr.bf16.mxu1 %v3970_v0  ;;  %v3972_v2 = vld [vmem:[#allocation6 + $0x10] sm:$0xff]   ;;  %v3973_v3 = vld [vmem:[#allocation6 + $0x18] sm:$0xff]   ;;  %v3978_v4 = vld [vmem:[%s4379_s19] sm:$0xff]   ;;  %s2815_s11 = sshll.u32 %s4468_s24, 4  ;;  %s4655_s18 = scalar_lea.hbm %s4713_s3, %s3277_s10  ;;  %s4657_s11 = int_to_ptr.vmem [resolvable:$true] %s2815_s11 }
  0x5c   : > { %3734 = vmatpush3.bf16.msra.mxu0 %v3970_v0  ;;  %3885 = vmatpush3.bf16.msra.mxu1 %v3970_v0  ;;  %v3979_v5 = vld [vmem:[%s4379_s19 + $0x100] sm:$0xff]   ;;  %v3975_v7 = vld [vmem:[#allocation6 + $0x28] sm:$0xff]   ;;  %v3976_v8 = vld [vmem:[#allocation6 + $0x30] sm:$0xff]   ;;  %s2801_s25 = scalar_lea.sflag [#allocation5], %s4373_s30  ;;  %s4100_s8 = scalar_lea.vmem %s4657_s11, 8192 }
  0x5d   : > { %3735 = vmatprep.subr.bf16.mxu0 %v3971_v1  ;;  %3878 = vmatprep.subr.bf16.mxu1 %v3971_v1  ;;  %v3974_v6 = vld [vmem:[#allocation6 + $0x20] sm:$0xff]   ;;  %v3977_v9 = vld [vmem:[#allocation6 + $0x38] sm:$0xff]   ;;  %v3980_v10 = vld [vmem:[%s4379_s19 + $0x8] sm:$0xff]   ;;  %p4101_p4 = scmp.ne.s32.totalorder %s4657_s11, %s4100_s8  ;;  %s4192_s26 = smov [#allocation8]  }
  0x5e   : > { %3749 = vmatprep.mubr.bf16.mxu0 %v3978_v4  ;;  %3813 = vmatprep.mubr.bf16.mxu1 %v3979_v5  ;;  %v3981_v11 = vld [vmem:[%s4379_s19 + $0x108] sm:$0xff]   ;;  %v3982_v12 = vld [vmem:[%s4379_s19 + $0x10] sm:$0xff]   ;;  %v3984_v14 = vld [vmem:[%s4379_s19 + $0x18] sm:$0xff]   ;;  %s4104_s21 = sshll.u32 %s4192_s26, 4  ;;  %s4105_s21 = int_to_ptr.vmem [resolvable:$false] %s4104_s21 }
  0x5f   : > { %v3983_v13 = vld [vmem:[%s4379_s19 + $0x110] sm:$0xff]   ;;  %v3985_v15 = vld [vmem:[%s4379_s19 + $0x118] sm:$0xff]   ;;  %v3986_v16 = vld [vmem:[%s4379_s19 + $0x20] sm:$0xff]   ;;  %p4102_p6 = pnand %p4101_p4, %p4314_p10  ;;  %s4106_s4 = scalar_lea.vmem %s4105_s21, 16384 }
  0x60   : > { %3736 = vmatpush3.bf16.msra.mxu0 %v3971_v1  ;;  %3886 = vmatpush3.bf16.msra.mxu1 %v3971_v1  ;;  %v3987_v17 = vld [vmem:[%s4379_s19 + $0x120] sm:$0xff]   ;;  %v3988_v18 = vld [vmem:[%s4379_s19 + $0x28] sm:$0xff]   ;;  %v3990_v20 = vld [vmem:[%s4379_s19 + $0x30] sm:$0xff]   ;;  %p4107_p12 = scmp.lt.s32.totalorder %s4657_s11, %s4105_s21  ;;  %p4108_p11 = scmp.lt.s32.totalorder %s4106_s4, %s4100_s8 }
  0x61   : > { %3737 = vmatprep.subr.bf16.mxu0 %v3972_v2  ;;  %3879 = vmatprep.subr.bf16.mxu1 %v3972_v2  ;;  %v3989_v19 = vld [vmem:[%s4379_s19 + $0x128] sm:$0xff]   ;;  %v3991_v21 = vld [vmem:[%s4379_s19 + $0x130] sm:$0xff]   ;;  %v3992_v22 = vld [vmem:[%s4379_s19 + $0x38] sm:$0xff]   ;;  %p4103_p8 = pneg %p4102_p6 }
  0x62   : > { %v3993_v23 = vld [vmem:[%s4379_s19 + $0x138] sm:$0xff]   ;;  %v3994_v24 = vld [vmem:[%s4379_s19 + $0x40] sm:$0xff]   ;;  %v3996_v26 = vld [vmem:[%s4379_s19 + $0x48] sm:$0xff]   ;;  %p4109_p0 = por %p4108_p11, %p4107_p12 }
  0x63   : > { %v3995_v25 = vld [vmem:[%s4379_s19 + $0x140] sm:$0xff]   ;;  %v3997_v27 = vld [vmem:[%s4379_s19 + $0x148] sm:$0xff]   ;;  %v3998_v28 = vld [vmem:[%s4379_s19 + $0x50] sm:$0xff]  }
  0x64   : > { %3738 = vmatpush3.bf16.msra.mxu0 %v3972_v2  ;;  %3887 = vmatpush3.bf16.msra.mxu1 %v3972_v2  ;;  %v3999_v29 = vld [vmem:[%s4379_s19 + $0x150] sm:$0xff]   ;;  %v4000_v30 = vld [vmem:[%s4379_s19 + $0x58] sm:$0xff]   ;;  %v4002_v32 = vld [vmem:[%s4379_s19 + $0x60] sm:$0xff]   ;;  %p4110_p5 = pnand %p4109_p0, %p4103_p8 }
  0x65   : > { %3739 = vmatprep.subr.bf16.mxu0 %v3973_v3  ;;  %3880 = vmatprep.subr.bf16.mxu1 %v3973_v3  ;;  %v4001_v31 = vld [vmem:[%s4379_s19 + $0x158] sm:$0xff]   ;;  %v4003_v33 = vld [vmem:[%s4379_s19 + $0x160] sm:$0xff]   ;;  %v4004_v34 = vld [vmem:[%s4379_s19 + $0x68] sm:$0xff]  }
  0x66   : > { %v4005_v35 = vld [vmem:[%s4379_s19 + $0x168] sm:$0xff]   ;;  %v4006_v36 = vld [vmem:[%s4379_s19 + $0x70] sm:$0xff]   ;;  %v4008_v38 = vld [vmem:[%s4379_s19 + $0x78] sm:$0xff]  }
  0x67   : > { %v4007_v37 = vld [vmem:[%s4379_s19 + $0x170] sm:$0xff]   ;;  %v4009_v39 = vld [vmem:[%s4379_s19 + $0x178] sm:$0xff]   ;;  %v4010_v40 = vld [vmem:[%s4379_s19 + $0x80] sm:$0xff]  }
  0x68   : > { %3740 = vmatpush3.bf16.msra.mxu0 %v3973_v3  ;;  %3888 = vmatpush3.bf16.msra.mxu1 %v3973_v3  ;;  %v4011_v41 = vld [vmem:[%s4379_s19 + $0x180] sm:$0xff]   ;;  %v4012_v42 = vld [vmem:[%s4379_s19 + $0x88] sm:$0xff]   ;;  %v4014_v44 = vld [vmem:[%s4379_s19 + $0x90] sm:$0xff]  }
  0x69   : > { %3741 = vmatprep.subr.bf16.mxu0 %v3974_v6  ;;  %3881 = vmatprep.subr.bf16.mxu1 %v3974_v6  ;;  %v4013_v43 = vld [vmem:[%s4379_s19 + $0x188] sm:$0xff]   ;;  %v4015_v45 = vld [vmem:[%s4379_s19 + $0x190] sm:$0xff]   ;;  %v4016_v46 = vld [vmem:[%s4379_s19 + $0x98] sm:$0xff]  }
  0x6a   : > { %v4017_v47 = vld [vmem:[%s4379_s19 + $0x198] sm:$0xff]   ;;  %v4018_v48 = vld [vmem:[%s4379_s19 + $0xa0] sm:$0xff]   ;;  %v4020_v50 = vld [vmem:[%s4379_s19 + $0xa8] sm:$0xff]  }
  0x6b   : > { %v4019_v49 = vld [vmem:[%s4379_s19 + $0x1a0] sm:$0xff]   ;;  %v4021_v51 = vld [vmem:[%s4379_s19 + $0x1a8] sm:$0xff]   ;;  %v4022_v52 = vld [vmem:[%s4379_s19 + $0xb0] sm:$0xff]  }
  0x6c   : > { %3742 = vmatpush3.bf16.msra.mxu0 %v3974_v6  ;;  %3889 = vmatpush3.bf16.msra.mxu1 %v3974_v6  ;;  %v4023_v53 = vld [vmem:[%s4379_s19 + $0x1b0] sm:$0xff]   ;;  %v4024_v54 = vld [vmem:[%s4379_s19 + $0xb8] sm:$0xff]   ;;  %v4026_v56 = vld [vmem:[%s4379_s19 + $0xc0] sm:$0xff]  }
  0x6d   : > { %3743 = vmatprep.subr.bf16.mxu0 %v3975_v7  ;;  %3882 = vmatprep.subr.bf16.mxu1 %v3975_v7  ;;  %v4025_v55 = vld [vmem:[%s4379_s19 + $0x1b8] sm:$0xff]   ;;  %v4027_v57 = vld [vmem:[%s4379_s19 + $0x1c0] sm:$0xff]   ;;  %v4028_v58 = vld [vmem:[%s4379_s19 + $0xc8] sm:$0xff]  }
  0x6e   : > { %v4029_v59 = vld [vmem:[%s4379_s19 + $0x1c8] sm:$0xff]   ;;  %v4030_v60 = vld [vmem:[%s4379_s19 + $0xd0] sm:$0xff]   ;;  %v4032_v62 = vld [vmem:[%s4379_s19 + $0xd8] sm:$0xff]  }
  0x6f   : > { %v4031_v61 = vld [vmem:[%s4379_s19 + $0x1d0] sm:$0xff]   ;;  %v4033_v63 = vld [vmem:[%s4379_s19 + $0x1d8] sm:$0xff]   ;;  %v4034_v0 = vld [vmem:[%s4379_s19 + $0xe0] sm:$0xff]  }
  0x70   : > { %3744 = vmatpush3.bf16.msra.mxu0 %v3975_v7  ;;  %3890 = vmatpush3.bf16.msra.mxu1 %v3975_v7  ;;  %v4035_v1 = vld [vmem:[%s4379_s19 + $0x1e0] sm:$0xff]   ;;  %v4036_v2 = vld [vmem:[%s4379_s19 + $0xe8] sm:$0xff]   ;;  %v4038_v4 = vld [vmem:[%s4379_s19 + $0xf0] sm:$0xff]  }
  0x71   : > { %3745 = vmatprep.subr.bf16.mxu0 %v3976_v8  ;;  %3883 = vmatprep.subr.bf16.mxu1 %v3976_v8  ;;  %v4037_v3 = vld [vmem:[%s4379_s19 + $0x1e8] sm:$0xff]   ;;  %v4039_v5 = vld [vmem:[%s4379_s19 + $0x1f0] sm:$0xff]   ;;  %v4040_v6 = vld [vmem:[%s4379_s19 + $0xf8] sm:$0xff]  }
  0x72   : > { %v4041_v7 = vld [vmem:[%s4379_s19 + $0x1f8] sm:$0xff]  }
  0x74   : > { %3746 = vmatpush3.bf16.msra.mxu0 %v3976_v8  ;;  %3891 = vmatpush3.bf16.msra.mxu1 %v3976_v8 }
  0x75   : > { %3747 = vmatprep.subr.bf16.mxu0 %v3977_v9  ;;  %3884 = vmatprep.subr.bf16.mxu1 %v3977_v9 }
  0x78   : > { %3748 = vmatpush3.bf16.msra.mxu0 %v3977_v9  ;;  %3892 = vmatpush3.bf16.msra.mxu1 %v3977_v9  ;;  %v4456_v9 = vld [vmem:[%s4712_s2] ss:$0 sm:$0xff] }
  0x7b   : > { %3750 = vmatmul.mubr.bf16.vlgmr.msra.gmra.mrb[0].mxu0 %v3980_v10  ;;  %3814 = vmatmul.mubr.bf16.vlgmr.msra.gmra.mrb[0].mxu1 %v3981_v11 }
  0x7c   : > { %3753 = vmatprep.mubr.bf16.mxu0 %v3982_v12  ;;  %3817 = vmatprep.mubr.bf16.mxu1 %v3983_v13 }
  0x83   : > { %3754 = vmatmul.mubr.bf16.gmra.mrb[4].mxu0 %v3984_v14  ;;  %3818 = vmatmul.mubr.bf16.gmra.mrb[4].mxu1 %v3985_v15 }
  0x84   : > { %3757 = vmatprep.mubr.bf16.mxu0 %v3986_v16  ;;  %3821 = vmatprep.mubr.bf16.mxu1 %v3987_v17 }
  0x8b   : > { %3758 = vmatmul.mubr.bf16.gmra.mrb[8].mxu0 %v3988_v18  ;;  %3822 = vmatmul.mubr.bf16.gmra.mrb[8].mxu1 %v3989_v19 }
  0x8c   : > { %3761 = vmatprep.mubr.bf16.mxu0 %v3990_v20  ;;  %3825 = vmatprep.mubr.bf16.mxu1 %v3991_v21 }
  0x93   : > { %3762 = vmatmul.mubr.bf16.gmra.mrb[12].mxu0 %v3992_v22  ;;  %3826 = vmatmul.mubr.bf16.gmra.mrb[12].mxu1 %v3993_v23 }
  0x94   : > { %3765 = vmatprep.mubr.bf16.mxu0 %v3994_v24  ;;  %3829 = vmatprep.mubr.bf16.mxu1 %v3995_v25 }
  0x9b   : > { %3766 = vmatmul.mubr.bf16.gmra.mrb[16].mxu0 %v3996_v26  ;;  %3830 = vmatmul.mubr.bf16.gmra.mrb[16].mxu1 %v3997_v27 }
  0x9c   : > { %3769 = vmatprep.mubr.bf16.mxu0 %v3998_v28  ;;  %3833 = vmatprep.mubr.bf16.mxu1 %v3999_v29 }
  0xa3   : > { %3770 = vmatmul.mubr.bf16.gmra.mrb[20].mxu0 %v4000_v30  ;;  %3834 = vmatmul.mubr.bf16.gmra.mrb[20].mxu1 %v4001_v31 }
  0xa4   : > { %3773 = vmatprep.mubr.bf16.mxu0 %v4002_v32  ;;  %3837 = vmatprep.mubr.bf16.mxu1 %v4003_v33 }
  0xab   : > { %3774 = vmatmul.mubr.bf16.gmra.mrb[24].mxu0 %v4004_v34  ;;  %3838 = vmatmul.mubr.bf16.gmra.mrb[24].mxu1 %v4005_v35 }
  0xac   : > { %3777 = vmatprep.mubr.bf16.mxu0 %v4006_v36  ;;  %3841 = vmatprep.mubr.bf16.mxu1 %v4007_v37 }
  0xb3   : > { %3778 = vmatmul.mubr.bf16.gmra.mrb[28].mxu0 %v4008_v38  ;;  %3842 = vmatmul.mubr.bf16.gmra.mrb[28].mxu1 %v4009_v39 }
  0xb4   : > { %3781 = vmatprep.mubr.bf16.mxu0 %v4010_v40  ;;  %3845 = vmatprep.mubr.bf16.mxu1 %v4011_v41 }
  0xbb   : > { %3782 = vmatmul.mubr.bf16.gmra.mrb[32].mxu0 %v4012_v42  ;;  %3846 = vmatmul.mubr.bf16.gmra.mrb[32].mxu1 %v4013_v43 }
  0xbc   : > { %3785 = vmatprep.mubr.bf16.mxu0 %v4014_v44  ;;  %3849 = vmatprep.mubr.bf16.mxu1 %v4015_v45 }
  0xc3   : > { %3786 = vmatmul.mubr.bf16.gmra.mrb[36].mxu0 %v4016_v46  ;;  %3850 = vmatmul.mubr.bf16.gmra.mrb[36].mxu1 %v4017_v47 }
  0xc4   : > { %3789 = vmatprep.mubr.bf16.mxu0 %v4018_v48  ;;  %3853 = vmatprep.mubr.bf16.mxu1 %v4019_v49 }
  0xcb   : > { %3790 = vmatmul.mubr.bf16.gmra.mrb[40].mxu0 %v4020_v50  ;;  %3854 = vmatmul.mubr.bf16.gmra.mrb[40].mxu1 %v4021_v51 }
  0xcc   : > { %3793 = vmatprep.mubr.bf16.mxu0 %v4022_v52  ;;  %3857 = vmatprep.mubr.bf16.mxu1 %v4023_v53 }
  0xd3   : > { %3794 = vmatmul.mubr.bf16.gmra.mrb[44].mxu0 %v4024_v54  ;;  %3858 = vmatmul.mubr.bf16.gmra.mrb[44].mxu1 %v4025_v55 }
  0xd4   : > { %3797 = vmatprep.mubr.bf16.mxu0 %v4026_v56  ;;  %3861 = vmatprep.mubr.bf16.mxu1 %v4027_v57 }
  0xdb   : > { %3798 = vmatmul.mubr.bf16.gmra.mrb[48].mxu0 %v4028_v58  ;;  %3862 = vmatmul.mubr.bf16.gmra.mrb[48].mxu1 %v4029_v59 }
  0xdc   : > { %3801 = vmatprep.mubr.bf16.mxu0 %v4030_v60  ;;  %3865 = vmatprep.mubr.bf16.mxu1 %v4031_v61 }
  0xe3   : > { %3802 = vmatmul.mubr.bf16.gmra.mrb[52].mxu0 %v4032_v62  ;;  %3866 = vmatmul.mubr.bf16.gmra.mrb[52].mxu1 %v4033_v63 }
  0xe4   : > { %3805 = vmatprep.mubr.bf16.mxu0 %v4034_v0  ;;  %3869 = vmatprep.mubr.bf16.mxu1 %v4035_v1 }
  0xeb   : > { %3806 = vmatmul.mubr.bf16.gmra.mrb[56].mxu0 %v4036_v2  ;;  %3870 = vmatmul.mubr.bf16.gmra.mrb[56].mxu1 %v4037_v3 }
  0xec   : > { %3809 = vmatprep.mubr.bf16.mxu0 %v4038_v4  ;;  %3873 = vmatprep.mubr.bf16.mxu1 %v4039_v5 }
  0xf3   : > { %3810 = vmatmul.mubr.bf16.gmra.mrb[60].mxu0 %v4040_v6  ;;  %3874 = vmatmul.mubr.bf16.gmra.mrb[60].mxu1 %v4041_v7 }
 0x14e   : > { %v3751_v8 = vpop.f32.mrb[0].mxu0  ;;  %v3815_v10 = vpop.f32.mrb[0].mxu1 }
 0x14f   : > { %v1127_v11 = vpop.f32.mrb[1].mxu0  ;;  %v1383_v12 = vpop.f32.mrb[1].mxu1  ;;  %v2034_v15 = vadd.f32 %v3751_v8, %v4456_v9  ;;  %v2098_v16 = vadd.f32 %v3815_v10, %v4456_v9 }
 0x150   : > { %v3752_v13 = vpop.f32.mrb[2].mxu0  ;;  %v3816_v14 = vpop.f32.mrb[2].mxu1  ;;  %v2032_v21 = vadd.f32 %v4456_v9, %v1127_v11  ;;  %v2096_v22 = vadd.f32 %v4456_v9, %v1383_v12 }
 0x151   : > { %v2035_v17 = vadd.f32 %v3752_v13, %v4456_v9  ;;  %v2099_v18 = vadd.f32 %v3816_v14, %v4456_v9  ;;  %v1130_v19 = vpop.f32.mrb[3].mxu0  ;;  %v1386_v20 = vpop.f32.mrb[3].mxu1 }
 0x152   : > { %v2033_v23 = vadd.f32 %v4456_v9, %v1130_v19  ;;  %v2097_v24 = vadd.f32 %v4456_v9, %v1386_v20 }
 0x153   : > { %v3286_v25 = vpack.c.bf16 %v2035_v17, %v2034_v15  ;;  %v3446_v26 = vpack.c.bf16 %v2099_v18, %v2098_v16 }
 0x154   : > { %v3281_v27 = vpack.c.bf16 %v2033_v23, %v2032_v21  ;;  %v3441_v28 = vpack.c.bf16 %v2097_v24, %v2096_v22 }
 0x155   : > { %3598 = vst [vmem:[%s4468_s24 + $0x8] sm:$0xff] %v3286_v25   ;;  %3630 = vst [vmem:[%s4468_s24 + $0x108] sm:$0xff] %v3446_v26  }
 0x156   : > { %3282 = vst [vmem:[%s4468_s24] sm:$0xff] %v3281_v27   ;;  %3629 = vst [vmem:[%s4468_s24 + $0x100] sm:$0xff] %v3441_v28   ;;  %v3755_v29 = vpop.f32.mrb[4].mxu0  ;;  %v3819_v30 = vpop.f32.mrb[4].mxu1 }
 0x157   : > { %v1143_v31 = vpop.f32.mrb[5].mxu0  ;;  %v1399_v32 = vpop.f32.mrb[5].mxu1  ;;  %v2038_v35 = vadd.f32 %v3755_v29, %v4456_v9  ;;  %v2102_v36 = vadd.f32 %v3819_v30, %v4456_v9 }
 0x158   : > { %v3756_v33 = vpop.f32.mrb[6].mxu0  ;;  %v3820_v34 = vpop.f32.mrb[6].mxu1  ;;  %v2036_v41 = vadd.f32 %v4456_v9, %v1143_v31  ;;  %v2100_v42 = vadd.f32 %v4456_v9, %v1399_v32 }
 0x159   : > { %v2039_v37 = vadd.f32 %v3756_v33, %v4456_v9  ;;  %v2103_v38 = vadd.f32 %v3820_v34, %v4456_v9  ;;  %v1146_v39 = vpop.f32.mrb[7].mxu0  ;;  %v1402_v40 = vpop.f32.mrb[7].mxu1 }
 0x15a   : > { %v2037_v43 = vadd.f32 %v4456_v9, %v1146_v39  ;;  %v2101_v44 = vadd.f32 %v4456_v9, %v1402_v40 }
 0x15b   : > { %v3296_v45 = vpack.c.bf16 %v2039_v37, %v2038_v35  ;;  %v3456_v46 = vpack.c.bf16 %v2103_v38, %v2102_v36 }
 0x15c   : > { %v3291_v47 = vpack.c.bf16 %v2037_v43, %v2036_v41  ;;  %v3451_v48 = vpack.c.bf16 %v2101_v44, %v2100_v42 }
 0x15d   : > { %3600 = vst [vmem:[%s4468_s24 + $0x18] sm:$0xff] %v3296_v45   ;;  %3632 = vst [vmem:[%s4468_s24 + $0x118] sm:$0xff] %v3456_v46  }
 0x15e   : > { %3599 = vst [vmem:[%s4468_s24 + $0x10] sm:$0xff] %v3291_v47   ;;  %3631 = vst [vmem:[%s4468_s24 + $0x110] sm:$0xff] %v3451_v48   ;;  %v3759_v49 = vpop.f32.mrb[8].mxu0  ;;  %v3823_v50 = vpop.f32.mrb[8].mxu1 }
 0x15f   : > { %v1159_v51 = vpop.f32.mrb[9].mxu0  ;;  %v1415_v52 = vpop.f32.mrb[9].mxu1  ;;  %v2042_v55 = vadd.f32 %v3759_v49, %v4456_v9  ;;  %v2106_v56 = vadd.f32 %v3823_v50, %v4456_v9 }
 0x160   : > { %v3760_v53 = vpop.f32.mrb[10].mxu0  ;;  %v3824_v54 = vpop.f32.mrb[10].mxu1  ;;  %v2040_v61 = vadd.f32 %v4456_v9, %v1159_v51  ;;  %v2104_v62 = vadd.f32 %v4456_v9, %v1415_v52 }
 0x161   : > { %v2043_v57 = vadd.f32 %v3760_v53, %v4456_v9  ;;  %v2107_v58 = vadd.f32 %v3824_v54, %v4456_v9  ;;  %v1162_v59 = vpop.f32.mrb[11].mxu0  ;;  %v1418_v60 = vpop.f32.mrb[11].mxu1 }
 0x162   : > { %v2041_v63 = vadd.f32 %v4456_v9, %v1162_v59  ;;  %v2105_v0 = vadd.f32 %v4456_v9, %v1418_v60 }
 0x163   : > { %v3306_v1 = vpack.c.bf16 %v2043_v57, %v2042_v55  ;;  %v3466_v2 = vpack.c.bf16 %v2107_v58, %v2106_v56 }
 0x164   : > { %v3301_v3 = vpack.c.bf16 %v2041_v63, %v2040_v61  ;;  %v3461_v4 = vpack.c.bf16 %v2105_v0, %v2104_v62 }
 0x165   : > { %3602 = vst [vmem:[%s4468_s24 + $0x28] sm:$0xff] %v3306_v1   ;;  %3634 = vst [vmem:[%s4468_s24 + $0x128] sm:$0xff] %v3466_v2  }
 0x166   : > { %3601 = vst [vmem:[%s4468_s24 + $0x20] sm:$0xff] %v3301_v3   ;;  %3633 = vst [vmem:[%s4468_s24 + $0x120] sm:$0xff] %v3461_v4   ;;  %v3763_v5 = vpop.f32.mrb[12].mxu0  ;;  %v3827_v6 = vpop.f32.mrb[12].mxu1 }
 0x167   : > { %v1175_v7 = vpop.f32.mrb[13].mxu0  ;;  %v1431_v8 = vpop.f32.mrb[13].mxu1  ;;  %v2046_v12 = vadd.f32 %v3763_v5, %v4456_v9  ;;  %v2110_v13 = vadd.f32 %v3827_v6, %v4456_v9 }
 0x168   : > { %v3764_v10 = vpop.f32.mrb[14].mxu0  ;;  %v3828_v11 = vpop.f32.mrb[14].mxu1  ;;  %v2044_v18 = vadd.f32 %v4456_v9, %v1175_v7  ;;  %v2108_v19 = vadd.f32 %v4456_v9, %v1431_v8 }
 0x169   : > { %v2047_v14 = vadd.f32 %v3764_v10, %v4456_v9  ;;  %v2111_v15 = vadd.f32 %v3828_v11, %v4456_v9  ;;  %v1178_v16 = vpop.f32.mrb[15].mxu0  ;;  %v1434_v17 = vpop.f32.mrb[15].mxu1 }
 0x16a   : > { %v2045_v20 = vadd.f32 %v4456_v9, %v1178_v16  ;;  %v2109_v21 = vadd.f32 %v4456_v9, %v1434_v17 }
 0x16b   : > { %v3316_v22 = vpack.c.bf16 %v2047_v14, %v2046_v12  ;;  %v3476_v23 = vpack.c.bf16 %v2111_v15, %v2110_v13 }
 0x16c   : > { %v3311_v24 = vpack.c.bf16 %v2045_v20, %v2044_v18  ;;  %v3471_v25 = vpack.c.bf16 %v2109_v21, %v2108_v19 }
 0x16d   : > { %3604 = vst [vmem:[%s4468_s24 + $0x38] sm:$0xff] %v3316_v22   ;;  %3636 = vst [vmem:[%s4468_s24 + $0x138] sm:$0xff] %v3476_v23  }
 0x16e   : > { %3603 = vst [vmem:[%s4468_s24 + $0x30] sm:$0xff] %v3311_v24   ;;  %3635 = vst [vmem:[%s4468_s24 + $0x130] sm:$0xff] %v3471_v25   ;;  %v3767_v26 = vpop.f32.mrb[16].mxu0  ;;  %v3831_v27 = vpop.f32.mrb[16].mxu1 }
 0x16f   : > { %v1191_v28 = vpop.f32.mrb[17].mxu0  ;;  %v1447_v29 = vpop.f32.mrb[17].mxu1  ;;  %v2050_v32 = vadd.f32 %v3767_v26, %v4456_v9  ;;  %v2114_v33 = vadd.f32 %v3831_v27, %v4456_v9 }
 0x170   : > { %v3768_v30 = vpop.f32.mrb[18].mxu0  ;;  %v3832_v31 = vpop.f32.mrb[18].mxu1  ;;  %v2048_v38 = vadd.f32 %v4456_v9, %v1191_v28  ;;  %v2112_v39 = vadd.f32 %v4456_v9, %v1447_v29 }
 0x171   : > { %v2051_v34 = vadd.f32 %v3768_v30, %v4456_v9  ;;  %v2115_v35 = vadd.f32 %v3832_v31, %v4456_v9  ;;  %v1194_v36 = vpop.f32.mrb[19].mxu0  ;;  %v1450_v37 = vpop.f32.mrb[19].mxu1 }
 0x172   : > { %v2049_v40 = vadd.f32 %v4456_v9, %v1194_v36  ;;  %v2113_v41 = vadd.f32 %v4456_v9, %v1450_v37 }
 0x173   : > { %v3326_v42 = vpack.c.bf16 %v2051_v34, %v2050_v32  ;;  %v3486_v43 = vpack.c.bf16 %v2115_v35, %v2114_v33 }
 0x174   : > { %v3321_v44 = vpack.c.bf16 %v2049_v40, %v2048_v38  ;;  %v3481_v45 = vpack.c.bf16 %v2113_v41, %v2112_v39 }
 0x175   : > { %3606 = vst [vmem:[%s4468_s24 + $0x48] sm:$0xff] %v3326_v42   ;;  %3638 = vst [vmem:[%s4468_s24 + $0x148] sm:$0xff] %v3486_v43  }
 0x176   : > { %3605 = vst [vmem:[%s4468_s24 + $0x40] sm:$0xff] %v3321_v44   ;;  %3637 = vst [vmem:[%s4468_s24 + $0x140] sm:$0xff] %v3481_v45   ;;  %v3771_v46 = vpop.f32.mrb[20].mxu0  ;;  %v3835_v47 = vpop.f32.mrb[20].mxu1 }
 0x177   : > { %v1207_v48 = vpop.f32.mrb[21].mxu0  ;;  %v1463_v49 = vpop.f32.mrb[21].mxu1  ;;  %v2054_v52 = vadd.f32 %v3771_v46, %v4456_v9  ;;  %v2118_v53 = vadd.f32 %v3835_v47, %v4456_v9 }
 0x178   : > { %v3772_v50 = vpop.f32.mrb[22].mxu0  ;;  %v3836_v51 = vpop.f32.mrb[22].mxu1  ;;  %v2052_v58 = vadd.f32 %v4456_v9, %v1207_v48  ;;  %v2116_v59 = vadd.f32 %v4456_v9, %v1463_v49 }
 0x179   : > { %v2055_v54 = vadd.f32 %v3772_v50, %v4456_v9  ;;  %v2119_v55 = vadd.f32 %v3836_v51, %v4456_v9  ;;  %v1210_v56 = vpop.f32.mrb[23].mxu0  ;;  %v1466_v57 = vpop.f32.mrb[23].mxu1 }
 0x17a   : > { %v2053_v60 = vadd.f32 %v4456_v9, %v1210_v56  ;;  %v2117_v61 = vadd.f32 %v4456_v9, %v1466_v57 }
 0x17b   : > { %v3336_v62 = vpack.c.bf16 %v2055_v54, %v2054_v52  ;;  %v3496_v63 = vpack.c.bf16 %v2119_v55, %v2118_v53 }
 0x17c   : > { %v3331_v0 = vpack.c.bf16 %v2053_v60, %v2052_v58  ;;  %v3491_v1 = vpack.c.bf16 %v2117_v61, %v2116_v59 }
 0x17d   : > { %3608 = vst [vmem:[%s4468_s24 + $0x58] sm:$0xff] %v3336_v62   ;;  %3640 = vst [vmem:[%s4468_s24 + $0x158] sm:$0xff] %v3496_v63  }
 0x17e   : > { %3607 = vst [vmem:[%s4468_s24 + $0x50] sm:$0xff] %v3331_v0   ;;  %3639 = vst [vmem:[%s4468_s24 + $0x150] sm:$0xff] %v3491_v1   ;;  %v3775_v2 = vpop.f32.mrb[24].mxu0  ;;  %v3839_v3 = vpop.f32.mrb[24].mxu1 }
 0x17f   : > { %v1223_v4 = vpop.f32.mrb[25].mxu0  ;;  %v1479_v5 = vpop.f32.mrb[25].mxu1  ;;  %v2058_v8 = vadd.f32 %v3775_v2, %v4456_v9  ;;  %v2122_v10 = vadd.f32 %v3839_v3, %v4456_v9 }
 0x180   : > { %v3776_v6 = vpop.f32.mrb[26].mxu0  ;;  %v3840_v7 = vpop.f32.mrb[26].mxu1  ;;  %v2056_v15 = vadd.f32 %v4456_v9, %v1223_v4  ;;  %v2120_v16 = vadd.f32 %v4456_v9, %v1479_v5 }
 0x181   : > { %v2059_v11 = vadd.f32 %v3776_v6, %v4456_v9  ;;  %v2123_v12 = vadd.f32 %v3840_v7, %v4456_v9  ;;  %v1226_v13 = vpop.f32.mrb[27].mxu0  ;;  %v1482_v14 = vpop.f32.mrb[27].mxu1 }
 0x182   : > { %v2057_v17 = vadd.f32 %v4456_v9, %v1226_v13  ;;  %v2121_v18 = vadd.f32 %v4456_v9, %v1482_v14 }
 0x183   : > { %v3346_v19 = vpack.c.bf16 %v2059_v11, %v2058_v8  ;;  %v3506_v20 = vpack.c.bf16 %v2123_v12, %v2122_v10 }
 0x184   : > { %v3341_v21 = vpack.c.bf16 %v2057_v17, %v2056_v15  ;;  %v3501_v22 = vpack.c.bf16 %v2121_v18, %v2120_v16 }
 0x185   : > { %3610 = vst [vmem:[%s4468_s24 + $0x68] sm:$0xff] %v3346_v19   ;;  %3642 = vst [vmem:[%s4468_s24 + $0x168] sm:$0xff] %v3506_v20  }
 0x186   : > { %3609 = vst [vmem:[%s4468_s24 + $0x60] sm:$0xff] %v3341_v21   ;;  %3641 = vst [vmem:[%s4468_s24 + $0x160] sm:$0xff] %v3501_v22   ;;  %v3779_v23 = vpop.f32.mrb[28].mxu0  ;;  %v3843_v24 = vpop.f32.mrb[28].mxu1 }
 0x187   : > { %v1239_v25 = vpop.f32.mrb[29].mxu0  ;;  %v1495_v26 = vpop.f32.mrb[29].mxu1  ;;  %v2062_v29 = vadd.f32 %v3779_v23, %v4456_v9  ;;  %v2126_v30 = vadd.f32 %v3843_v24, %v4456_v9 }
 0x188   : > { %v3780_v27 = vpop.f32.mrb[30].mxu0  ;;  %v3844_v28 = vpop.f32.mrb[30].mxu1  ;;  %v2060_v35 = vadd.f32 %v4456_v9, %v1239_v25  ;;  %v2124_v36 = vadd.f32 %v4456_v9, %v1495_v26 }
 0x189   : > { %v2063_v31 = vadd.f32 %v3780_v27, %v4456_v9  ;;  %v2127_v32 = vadd.f32 %v3844_v28, %v4456_v9  ;;  %v1242_v33 = vpop.f32.mrb[31].mxu0  ;;  %v1498_v34 = vpop.f32.mrb[31].mxu1 }
 0x18a   : > { %v2061_v37 = vadd.f32 %v4456_v9, %v1242_v33  ;;  %v2125_v38 = vadd.f32 %v4456_v9, %v1498_v34 }
 0x18b   : > { %v3356_v39 = vpack.c.bf16 %v2063_v31, %v2062_v29  ;;  %v3516_v40 = vpack.c.bf16 %v2127_v32, %v2126_v30 }
 0x18c   : > { %v3351_v41 = vpack.c.bf16 %v2061_v37, %v2060_v35  ;;  %v3511_v42 = vpack.c.bf16 %v2125_v38, %v2124_v36 }
 0x18d   : > { %3612 = vst [vmem:[%s4468_s24 + $0x78] sm:$0xff] %v3356_v39   ;;  %3644 = vst [vmem:[%s4468_s24 + $0x178] sm:$0xff] %v3516_v40  }
 0x18e   : > { %3611 = vst [vmem:[%s4468_s24 + $0x70] sm:$0xff] %v3351_v41   ;;  %3643 = vst [vmem:[%s4468_s24 + $0x170] sm:$0xff] %v3511_v42   ;;  %v3783_v43 = vpop.f32.mrb[32].mxu0  ;;  %v3847_v44 = vpop.f32.mrb[32].mxu1 }
 0x18f   : > { %v1255_v45 = vpop.f32.mrb[33].mxu0  ;;  %v1511_v46 = vpop.f32.mrb[33].mxu1  ;;  %v2066_v49 = vadd.f32 %v3783_v43, %v4456_v9  ;;  %v2130_v50 = vadd.f32 %v3847_v44, %v4456_v9 }
 0x190   : > { %v3784_v47 = vpop.f32.mrb[34].mxu0  ;;  %v3848_v48 = vpop.f32.mrb[34].mxu1  ;;  %v2064_v55 = vadd.f32 %v4456_v9, %v1255_v45  ;;  %v2128_v56 = vadd.f32 %v4456_v9, %v1511_v46 }
 0x191   : > { %v2067_v51 = vadd.f32 %v3784_v47, %v4456_v9  ;;  %v2131_v52 = vadd.f32 %v3848_v48, %v4456_v9  ;;  %v1258_v53 = vpop.f32.mrb[35].mxu0  ;;  %v1514_v54 = vpop.f32.mrb[35].mxu1 }
 0x192   : > { %v2065_v57 = vadd.f32 %v4456_v9, %v1258_v53  ;;  %v2129_v58 = vadd.f32 %v4456_v9, %v1514_v54 }
 0x193   : > { %v3366_v59 = vpack.c.bf16 %v2067_v51, %v2066_v49  ;;  %v3526_v60 = vpack.c.bf16 %v2131_v52, %v2130_v50 }
 0x194   : > { %v3361_v61 = vpack.c.bf16 %v2065_v57, %v2064_v55  ;;  %v3521_v62 = vpack.c.bf16 %v2129_v58, %v2128_v56 }
 0x195   : > { %3614 = vst [vmem:[%s4468_s24 + $0x88] sm:$0xff] %v3366_v59   ;;  %3646 = vst [vmem:[%s4468_s24 + $0x188] sm:$0xff] %v3526_v60  }
 0x196   : > { %3613 = vst [vmem:[%s4468_s24 + $0x80] sm:$0xff] %v3361_v61   ;;  %3645 = vst [vmem:[%s4468_s24 + $0x180] sm:$0xff] %v3521_v62   ;;  %v3787_v63 = vpop.f32.mrb[36].mxu0  ;;  %v3851_v0 = vpop.f32.mrb[36].mxu1 }
 0x197   : > { %v1271_v1 = vpop.f32.mrb[37].mxu0  ;;  %v1527_v2 = vpop.f32.mrb[37].mxu1  ;;  %v2070_v5 = vadd.f32 %v3787_v63, %v4456_v9  ;;  %v2134_v6 = vadd.f32 %v3851_v0, %v4456_v9 }
 0x198   : > { %v3788_v3 = vpop.f32.mrb[38].mxu0  ;;  %v3852_v4 = vpop.f32.mrb[38].mxu1  ;;  %v2068_v12 = vadd.f32 %v4456_v9, %v1271_v1  ;;  %v2132_v13 = vadd.f32 %v4456_v9, %v1527_v2 }
 0x199   : > { %v2071_v7 = vadd.f32 %v3788_v3, %v4456_v9  ;;  %v2135_v8 = vadd.f32 %v3852_v4, %v4456_v9  ;;  %v1274_v10 = vpop.f32.mrb[39].mxu0  ;;  %v1530_v11 = vpop.f32.mrb[39].mxu1 }
 0x19a   : > { %v2069_v14 = vadd.f32 %v4456_v9, %v1274_v10  ;;  %v2133_v15 = vadd.f32 %v4456_v9, %v1530_v11 }
 0x19b   : > { %v3376_v16 = vpack.c.bf16 %v2071_v7, %v2070_v5  ;;  %v3536_v17 = vpack.c.bf16 %v2135_v8, %v2134_v6 }
 0x19c   : > { %v3371_v18 = vpack.c.bf16 %v2069_v14, %v2068_v12  ;;  %v3531_v19 = vpack.c.bf16 %v2133_v15, %v2132_v13 }
 0x19d   : > { %3616 = vst [vmem:[%s4468_s24 + $0x98] sm:$0xff] %v3376_v16   ;;  %3648 = vst [vmem:[%s4468_s24 + $0x198] sm:$0xff] %v3536_v17  }
 0x19e   : > { %3615 = vst [vmem:[%s4468_s24 + $0x90] sm:$0xff] %v3371_v18   ;;  %3647 = vst [vmem:[%s4468_s24 + $0x190] sm:$0xff] %v3531_v19   ;;  %v3791_v20 = vpop.f32.mrb[40].mxu0  ;;  %v3855_v21 = vpop.f32.mrb[40].mxu1 }
 0x19f   : > { %v1287_v22 = vpop.f32.mrb[41].mxu0  ;;  %v1543_v23 = vpop.f32.mrb[41].mxu1  ;;  %v2074_v26 = vadd.f32 %v3791_v20, %v4456_v9  ;;  %v2138_v27 = vadd.f32 %v3855_v21, %v4456_v9 }
 0x1a0   : > { %v3792_v24 = vpop.f32.mrb[42].mxu0  ;;  %v3856_v25 = vpop.f32.mrb[42].mxu1  ;;  %v2072_v32 = vadd.f32 %v4456_v9, %v1287_v22  ;;  %v2136_v33 = vadd.f32 %v4456_v9, %v1543_v23 }
 0x1a1   : > { %v2075_v28 = vadd.f32 %v3792_v24, %v4456_v9  ;;  %v2139_v29 = vadd.f32 %v3856_v25, %v4456_v9  ;;  %v1290_v30 = vpop.f32.mrb[43].mxu0  ;;  %v1546_v31 = vpop.f32.mrb[43].mxu1 }
 0x1a2   : > { %v2073_v34 = vadd.f32 %v4456_v9, %v1290_v30  ;;  %v2137_v35 = vadd.f32 %v4456_v9, %v1546_v31 }
 0x1a3   : > { %v3386_v36 = vpack.c.bf16 %v2075_v28, %v2074_v26  ;;  %v3546_v37 = vpack.c.bf16 %v2139_v29, %v2138_v27 }
 0x1a4   : > { %v3381_v38 = vpack.c.bf16 %v2073_v34, %v2072_v32  ;;  %v3541_v39 = vpack.c.bf16 %v2137_v35, %v2136_v33 }
 0x1a5   : > { %3618 = vst [vmem:[%s4468_s24 + $0xa8] sm:$0xff] %v3386_v36   ;;  %3650 = vst [vmem:[%s4468_s24 + $0x1a8] sm:$0xff] %v3546_v37  }
 0x1a6   : > { %3617 = vst [vmem:[%s4468_s24 + $0xa0] sm:$0xff] %v3381_v38   ;;  %3649 = vst [vmem:[%s4468_s24 + $0x1a0] sm:$0xff] %v3541_v39   ;;  %v3795_v40 = vpop.f32.mrb[44].mxu0  ;;  %v3859_v41 = vpop.f32.mrb[44].mxu1 }
 0x1a7   : > { %v1303_v42 = vpop.f32.mrb[45].mxu0  ;;  %v1559_v43 = vpop.f32.mrb[45].mxu1  ;;  %v2078_v46 = vadd.f32 %v3795_v40, %v4456_v9  ;;  %v2142_v47 = vadd.f32 %v3859_v41, %v4456_v9 }
 0x1a8   : > { %v3796_v44 = vpop.f32.mrb[46].mxu0  ;;  %v3860_v45 = vpop.f32.mrb[46].mxu1  ;;  %v2076_v52 = vadd.f32 %v4456_v9, %v1303_v42  ;;  %v2140_v53 = vadd.f32 %v4456_v9, %v1559_v43 }
 0x1a9   : > { %v2079_v48 = vadd.f32 %v3796_v44, %v4456_v9  ;;  %v2143_v49 = vadd.f32 %v3860_v45, %v4456_v9  ;;  %v1306_v50 = vpop.f32.mrb[47].mxu0  ;;  %v1562_v51 = vpop.f32.mrb[47].mxu1 }
 0x1aa   : > { %v2077_v54 = vadd.f32 %v4456_v9, %v1306_v50  ;;  %v2141_v55 = vadd.f32 %v4456_v9, %v1562_v51 }
 0x1ab   : > { %v3396_v56 = vpack.c.bf16 %v2079_v48, %v2078_v46  ;;  %v3556_v57 = vpack.c.bf16 %v2143_v49, %v2142_v47 }
 0x1ac   : > { %v3391_v58 = vpack.c.bf16 %v2077_v54, %v2076_v52  ;;  %v3551_v59 = vpack.c.bf16 %v2141_v55, %v2140_v53 }
 0x1ad   : > { %3620 = vst [vmem:[%s4468_s24 + $0xb8] sm:$0xff] %v3396_v56   ;;  %3652 = vst [vmem:[%s4468_s24 + $0x1b8] sm:$0xff] %v3556_v57  }
 0x1ae   : > { %3619 = vst [vmem:[%s4468_s24 + $0xb0] sm:$0xff] %v3391_v58   ;;  %3651 = vst [vmem:[%s4468_s24 + $0x1b0] sm:$0xff] %v3551_v59   ;;  %v3799_v60 = vpop.f32.mrb[48].mxu0  ;;  %v3863_v61 = vpop.f32.mrb[48].mxu1 }
 0x1af   : > { %v1319_v62 = vpop.f32.mrb[49].mxu0  ;;  %v1575_v63 = vpop.f32.mrb[49].mxu1  ;;  %v2082_v2 = vadd.f32 %v3799_v60, %v4456_v9  ;;  %v2146_v3 = vadd.f32 %v3863_v61, %v4456_v9 }
 0x1b0   : > { %v3800_v0 = vpop.f32.mrb[50].mxu0  ;;  %v3864_v1 = vpop.f32.mrb[50].mxu1  ;;  %v2080_v8 = vadd.f32 %v4456_v9, %v1319_v62  ;;  %v2144_v10 = vadd.f32 %v4456_v9, %v1575_v63 }
 0x1b1   : > { %v2083_v4 = vadd.f32 %v3800_v0, %v4456_v9  ;;  %v2147_v5 = vadd.f32 %v3864_v1, %v4456_v9  ;;  %v1322_v6 = vpop.f32.mrb[51].mxu0  ;;  %v1578_v7 = vpop.f32.mrb[51].mxu1 }
 0x1b2   : > { %v2081_v11 = vadd.f32 %v4456_v9, %v1322_v6  ;;  %v2145_v12 = vadd.f32 %v4456_v9, %v1578_v7 }
 0x1b3   : > { %v3406_v13 = vpack.c.bf16 %v2083_v4, %v2082_v2  ;;  %v3566_v14 = vpack.c.bf16 %v2147_v5, %v2146_v3 }
 0x1b4   : > { %v3401_v15 = vpack.c.bf16 %v2081_v11, %v2080_v8  ;;  %v3561_v16 = vpack.c.bf16 %v2145_v12, %v2144_v10 }
 0x1b5   : > { %3622 = vst [vmem:[%s4468_s24 + $0xc8] sm:$0xff] %v3406_v13   ;;  %3654 = vst [vmem:[%s4468_s24 + $0x1c8] sm:$0xff] %v3566_v14  }
 0x1b6   : > { %3621 = vst [vmem:[%s4468_s24 + $0xc0] sm:$0xff] %v3401_v15   ;;  %3653 = vst [vmem:[%s4468_s24 + $0x1c0] sm:$0xff] %v3561_v16   ;;  %v3803_v17 = vpop.f32.mrb[52].mxu0  ;;  %v3867_v18 = vpop.f32.mrb[52].mxu1 }
 0x1b7   : > { %v1335_v19 = vpop.f32.mrb[53].mxu0  ;;  %v1591_v20 = vpop.f32.mrb[53].mxu1  ;;  %v2086_v23 = vadd.f32 %v3803_v17, %v4456_v9  ;;  %v2150_v24 = vadd.f32 %v3867_v18, %v4456_v9 }
 0x1b8   : > { %v3804_v21 = vpop.f32.mrb[54].mxu0  ;;  %v3868_v22 = vpop.f32.mrb[54].mxu1  ;;  %v2084_v29 = vadd.f32 %v4456_v9, %v1335_v19  ;;  %v2148_v30 = vadd.f32 %v4456_v9, %v1591_v20 }
 0x1b9   : > { %v2087_v25 = vadd.f32 %v3804_v21, %v4456_v9  ;;  %v2151_v26 = vadd.f32 %v3868_v22, %v4456_v9  ;;  %v1338_v27 = vpop.f32.mrb[55].mxu0  ;;  %v1594_v28 = vpop.f32.mrb[55].mxu1 }
 0x1ba   : > { %v2085_v31 = vadd.f32 %v4456_v9, %v1338_v27  ;;  %v2149_v32 = vadd.f32 %v4456_v9, %v1594_v28 }
 0x1bb   : > { %v3416_v33 = vpack.c.bf16 %v2087_v25, %v2086_v23  ;;  %v3576_v34 = vpack.c.bf16 %v2151_v26, %v2150_v24 }
 0x1bc   : > { %v3411_v35 = vpack.c.bf16 %v2085_v31, %v2084_v29  ;;  %v3571_v36 = vpack.c.bf16 %v2149_v32, %v2148_v30 }
 0x1bd   : > { %3624 = vst [vmem:[%s4468_s24 + $0xd8] sm:$0xff] %v3416_v33   ;;  %3656 = vst [vmem:[%s4468_s24 + $0x1d8] sm:$0xff] %v3576_v34  }
 0x1be   : > { %3623 = vst [vmem:[%s4468_s24 + $0xd0] sm:$0xff] %v3411_v35   ;;  %3655 = vst [vmem:[%s4468_s24 + $0x1d0] sm:$0xff] %v3571_v36   ;;  %v3807_v37 = vpop.f32.mrb[56].mxu0  ;;  %v3871_v38 = vpop.f32.mrb[56].mxu1 }
 0x1bf   : > { %v1351_v39 = vpop.f32.mrb[57].mxu0  ;;  %v1607_v40 = vpop.f32.mrb[57].mxu1  ;;  %v2090_v43 = vadd.f32 %v3807_v37, %v4456_v9  ;;  %v2154_v44 = vadd.f32 %v3871_v38, %v4456_v9 }
 0x1c0   : > { %v3808_v41 = vpop.f32.mrb[58].mxu0  ;;  %v3872_v42 = vpop.f32.mrb[58].mxu1  ;;  %v2088_v49 = vadd.f32 %v4456_v9, %v1351_v39  ;;  %v2152_v50 = vadd.f32 %v4456_v9, %v1607_v40 }
 0x1c1   : > { %v2091_v45 = vadd.f32 %v3808_v41, %v4456_v9  ;;  %v2155_v46 = vadd.f32 %v3872_v42, %v4456_v9  ;;  %v1354_v47 = vpop.f32.mrb[59].mxu0  ;;  %v1610_v48 = vpop.f32.mrb[59].mxu1 }
 0x1c2   : > { %v2089_v51 = vadd.f32 %v4456_v9, %v1354_v47  ;;  %v2153_v52 = vadd.f32 %v4456_v9, %v1610_v48 }
 0x1c3   : > { %v3426_v53 = vpack.c.bf16 %v2091_v45, %v2090_v43  ;;  %v3586_v54 = vpack.c.bf16 %v2155_v46, %v2154_v44 }
 0x1c4   : > { %v3421_v55 = vpack.c.bf16 %v2089_v51, %v2088_v49  ;;  %v3581_v56 = vpack.c.bf16 %v2153_v52, %v2152_v50 }
 0x1c5   : > { %3626 = vst [vmem:[%s4468_s24 + $0xe8] sm:$0xff] %v3426_v53   ;;  %3658 = vst [vmem:[%s4468_s24 + $0x1e8] sm:$0xff] %v3586_v54  }
 0x1c6   : > { %3625 = vst [vmem:[%s4468_s24 + $0xe0] sm:$0xff] %v3421_v55   ;;  %3657 = vst [vmem:[%s4468_s24 + $0x1e0] sm:$0xff] %v3581_v56   ;;  %v3811_v57 = vpop.f32.mrb[60].mxu0  ;;  %v3875_v58 = vpop.f32.mrb[60].mxu1 }
 0x1c7   : > { %v1367_v59 = vpop.f32.mrb[61].mxu0  ;;  %v1623_v60 = vpop.f32.mrb[61].mxu1  ;;  %v2094_v63 = vadd.f32 %v3811_v57, %v4456_v9  ;;  %v2158_v0 = vadd.f32 %v3875_v58, %v4456_v9 }
 0x1c8   : > { %v3812_v61 = vpop.f32.mrb[62].mxu0  ;;  %v3876_v62 = vpop.f32.mrb[62].mxu1  ;;  %v2092_v5 = vadd.f32 %v4456_v9, %v1367_v59  ;;  %v2156_v6 = vadd.f32 %v4456_v9, %v1623_v60 }
 0x1c9   : > { %v2095_v1 = vadd.f32 %v3812_v61, %v4456_v9  ;;  %v2159_v2 = vadd.f32 %v3876_v62, %v4456_v9  ;;  %v1370_v3 = vpop.f32.mrb[63].mxu0  ;;  %v1626_v4 = vpop.f32.mrb[63].mxu1 }
 0x1ca   : > { %v2093_v7 = vadd.f32 %v4456_v9, %v1370_v3  ;;  %v2157_v8 = vadd.f32 %v4456_v9, %v1626_v4 }
 0x1cb   : > { %v3436_v10 = vpack.c.bf16 %v2095_v1, %v2094_v63  ;;  %v3596_v11 = vpack.c.bf16 %v2159_v2, %v2158_v0 }
 0x1cc   : > { %v3431_v12 = vpack.c.bf16 %v2093_v7, %v2092_v5  ;;  %v3591_v13 = vpack.c.bf16 %v2157_v8, %v2156_v6 }
 0x1cd   : > { %3628 = vst [vmem:[%s4468_s24 + $0xf8] sm:$0xff] %v3436_v10   ;;  %3660 = vst [vmem:[%s4468_s24 + $0x1f8] sm:$0xff] %v3596_v11  }
 0x1ce   : > { %3627 = vst [vmem:[%s4468_s24 + $0xf0] sm:$0xff] %v3431_v12   ;;  %3659 = vst [vmem:[%s4468_s24 + $0x1f0] sm:$0xff] %v3591_v13  }
 0x1cf   : > { %4113 = shalt.err (!%p4110_p5)
}
 0x1d0   : > { %s4114_s6 = scalar_lea.hbm %s4655_s18, 8192  ;;  %s4118_s19 = scalar_lea.hbm %s4713_s3, 16384 }
 0x1d1   : > { %p4115_p9 = scmp.ne.s32.totalorder %s4655_s18, %s4114_s6  ;;  %p4119_p3 = scmp.lt.u32.totalorder %s4655_s18, %s4713_s3 }
 0x1d2   : > { %p4120_p7 = scmp.lt.u32.totalorder %s4118_s19, %s4114_s6  ;;  %p4122_p4 = scmp.lt.u32.totalorder %s4114_s6, %s4655_s18 }
 0x1d3   : > { %p4116_p1 = pnand %p4115_p9, %p4314_p10 }
 0x1d4   : > { %p4121_p13 = por %p4120_p7, %p4119_p3 }
 0x1d5   : > { %p4117_p2 = pneg %p4116_p1 }
 0x1d6   : > { %p4123_p6 = por %p4122_p4, %p4121_p13 }
 0x1d8   : > { %p4124_p8 = pnand %p4123_p6, %p4117_p2 }
 0x1da   : > { %4127 = shalt.err (!%p4124_p8)
}
 0x1db   : > { %s4193_s24 = smov 64   ;;  %s4194_s10 = smov 4  }
 0x1dc   : > { %3899 = dma.vmem_to_hbm [thread:$0]  (%p4314_p10), %s4657_s11, 8192, %s4655_s18, %s2801_s25, %s4193_s24, %s4193_s24, %s4194_s10  }
 0x1dd PF: > { %s2830_s15 = sand.u32 1, %s4166_s12   ;;  %p4731_p12 = scmp.ne.s32.totalorder %s4721_s23, 0 }
 0x1de   : > { %p4732_p11 = scmp.ge.s32.totalorder %s4186_s17, 2  ;;  %s2831_s9 = scalar_lea.sflag [#allocation5], %s2830_s15 }
 0x1e0   : > { %p3910_p0 = pnand %p4732_p11, %p4731_p12 }
 0x1e2   : > { %4161 = dma.done.wait (!%p3910_p0), %s2831_s9, 8192  }
 0x1e3   : > { %4163 = vsyncadd (!%p3910_p0), %s2831_s9, 4294959104  ;;  %s20_s17 = sadd.s32 1, %s4186_s17   ;;  %s4733_s12 = smov %s4170_s13 }
 0x1e4   : > { %p17_p5 = scmp.ge.s32.totalorder %s20_s17, 4   ;;  %s4734_s13 = smov %s4174_s14 }
 0x1e5   : > { %s4735_s14 = smov %s4323_s5  ;;  %s4736_s15 = smov %s4182_s16 }
 0x1e6   : > { %s4737_s16 = smov %s4739_s28  ;;  %19 = sbr.rel (!%p17_p5) target bundleno = 7 (0x7), region = 93 }
 0x1ed   :  { %2836 = vsyncpa [#allocation4], 1 }
 0x1ee   :  { %2838 = vsyncpa [#allocation4 + $0x1], 1 }
 0x1ef   :  { %2839 = vsyncpa [#allocation7], 1 }
 0x1f0   :  { %2840 = vsyncpa [#allocation5], 1 }
 0x1f1   :  { %2842 = vsyncpa [#allocation5 + $0x1], 1 }

</bundles_post_ra>
